<compile_context>
chip_gen: v7x
topology: tpu7x:2x2x1
jax: 0.10.0
libtpu: 0.0.40
codegen_flags: <defaults>
</compile_context>

<pallas_src>
import functools

import numpy as np
import jax
import jax.numpy as jnp
from jax.experimental import pallas as pl
from jax.experimental.pallas import tpu as pltpu


_NEG_BIG = float(jnp.finfo(jnp.float32).min)   # finite, safe in f32 math


def _l2_normalize(x):
    x = x.astype(jnp.float32)
    nsq = jnp.sum(x * x, axis=-1, keepdims=True)
    return x * jax.lax.rsqrt(jnp.maximum(nsq, jnp.float32(1e-16)))


def _ntxent_kernel(zjs_ref, zis_ref, out_ref, *, inv_temp, tile_rows, use_cosine):
    """One grid step = `tile_rows` rows of the top half (zjs rows) plus the
    matching `tile_rows` rows of the bottom half (zis rows) of the 2B x 2B
    similarity matrix.

    zjs_ref, zis_ref: (B, D) resident VMEM blocks, native dtype.
    out_ref:          (1, 8, 128) f32 block holding this tile's partial CE sum.
    """
    t = pl.program_id(0)
    B = zjs_ref.shape[0]
    align = tile_rows & (-tile_rows)               # largest pow2 divisor
    r0 = pl.multiple_of(t * tile_rows, align)

    # Full "key" matrices and this step's "query" row tiles.
    kj = zjs_ref[...]
    ki = zis_ref[...]
    qj = zjs_ref[pl.ds(r0, tile_rows), :]
    qi = zis_ref[pl.ds(r0, tile_rows), :]

    if use_cosine:
        # TODO(synk): torch CosineSimilarity clamps the *product* of norms by
        # eps=1e-8; the per-vector clamp here is identical for non-degenerate
        # inputs.
        kj = _l2_normalize(kj)
        ki = _l2_normalize(ki)
        qj = _l2_normalize(qj)
        qi = _l2_normalize(qi)

    scale = jnp.float32(inv_temp)
    dn = (((1,), (1,)), ((), ()))                  # contract feature axis (q @ k.T)

    # Four Gram blocks of the similarity matrix (MXU, f32 accumulation):
    #   global rows [r0, r0+TR)       -> [ s_jj | s_ji ]
    #   global rows [B+r0, B+r0+TR)   -> [ s_ij | s_ii ]
    s_jj = jax.lax.dot_general(qj, kj, dn, preferred_element_type=jnp.float32) * scale
    s_ji = jax.lax.dot_general(qj, ki, dn, preferred_element_type=jnp.float32) * scale
    s_ij = jax.lax.dot_general(qi, kj, dn, preferred_element_type=jnp.float32) * scale
    s_ii = jax.lax.dot_general(qi, ki, dn, preferred_element_type=jnp.float32) * scale

    # Self-similarity mask (same pattern for both diagonal blocks).
    rows = jax.lax.broadcasted_iota(jnp.int32, (tile_rows, B), 0) + r0
    cols = jax.lax.broadcasted_iota(jnp.int32, (tile_rows, B), 1)
    self_mask = rows == cols
    s_jj = jnp.where(self_mask, _NEG_BIG, s_jj)
    s_ii = jnp.where(self_mask, _NEG_BIG, s_ii)

    # Positive logit computed directly: <zjs_r, zis_r> / T (shared by the
    # matching top-half and bottom-half rows).
    pos = jnp.sum(qj.astype(jnp.float32) * qi.astype(jnp.float32),
                  axis=-1, keepdims=True) * scale

    # Blockwise logsumexp over j != i (positive included, self excluded).
    m_top = jnp.maximum(jnp.max(s_jj, axis=-1, keepdims=True),
                        jnp.max(s_ji, axis=-1, keepdims=True))
    lse_top = m_top + jnp.log(
        jnp.sum(jnp.exp(s_jj - m_top), axis=-1, keepdims=True)
        + jnp.sum(jnp.exp(s_ji - m_top), axis=-1, keepdims=True))

    m_bot = jnp.maximum(jnp.max(s_ij, axis=-1, keepdims=True),
                        jnp.max(s_ii, axis=-1, keepdims=True))
    lse_bot = m_bot + jnp.log(
        jnp.sum(jnp.exp(s_ij - m_bot), axis=-1, keepdims=True)
        + jnp.sum(jnp.exp(s_ii - m_bot), axis=-1, keepdims=True))

    partial = jnp.sum(lse_top + lse_bot - 2.0 * pos)
    out_ref[...] = jnp.full((1, 8, 128), partial, dtype=jnp.float32)


def _pick_tile_rows(B):
    # Target ~2 MiB per f32 (TR, B) block so the 4 Gram blocks + exp temps fit
    # comfortably inside scoped VMEM on every generation (v5e/v6e/v7x).
    target = max(8, min(512, (2 * 1024 * 1024) // max(1, 4 * B)))
    tr = min(B, target)
    while B % tr:          # keep tiles exact (no ragged-row masking needed)
        tr -= 1
    return tr


def ntxent_loss(zis, zjs, temperature, use_cosine_similarity=False, tile_rows=None):
    """Pallas forward of NTXentLoss: CrossEntropy(sum) over 2B rows / (2B)."""
    B, D = zis.shape
    assert zjs.shape == (B, D)
    if tile_rows is None:
        tile_rows = _pick_tile_rows(B)
    tile_rows = int(tile_rows)
    assert B % tile_rows == 0
    num_tiles = B // tile_rows

    kernel = functools.partial(
        _ntxent_kernel,
        inv_temp=1.0 / float(temperature),
        tile_rows=tile_rows,
        use_cosine=bool(use_cosine_similarity),
    )

    itemsize = jnp.dtype(zis.dtype).itemsize
    in_bytes = 2 * B * D * itemsize
    flops = 8 * B * B * D                       # four (B x B) Gram halves, contraction D
    transcendentals = 4 * B * B + 4 * B         # exps + logs
    bytes_accessed = in_bytes + num_tiles * 8 * 128 * 4
    cost = pl.CostEstimate(flops=int(flops),
                           transcendentals=int(transcendentals),
                           bytes_accessed=int(bytes_accessed))

    # VMEM budget: double-buffered resident inputs + f32 Gram/exp temporaries
    # (+ f32 normalised copies for cosine).  Clamp to a range that is legal on
    # v5e/v6e (128 MiB physical) and v7x (64 MiB physical).
    vmem_work = 12 * tile_rows * B * 4
    if use_cosine_similarity:
        vmem_work += 4 * B * D * 4
    vmem_est = 2 * in_bytes + vmem_work + 2 * 8 * 128 * 4
    vmem_limit = int(min(96 * 2**20, max(32 * 2**20, 2 * vmem_est)))

    partials = pl.pallas_call(
        kernel,
        out_shape=jax.ShapeDtypeStruct((num_tiles, 8, 128), jnp.float32),
        grid=(num_tiles,),
        in_specs=[
            pl.BlockSpec((B, D), lambda t: (0, 0)),   # zjs: resident, DMA'd once
            pl.BlockSpec((B, D), lambda t: (0, 0)),   # zis: resident, DMA'd once
        ],
        out_specs=pl.BlockSpec((1, 8, 128), lambda t: (t, 0, 0)),
        compiler_params=pltpu.CompilerParams(
            dimension_semantics=("parallel",),        # per-tile partials -> megacore OK
            vmem_limit_bytes=vmem_limit,
        ),
        cost_estimate=cost,
    )(zjs, zis)

    total = jnp.sum(partials[:, 0, 0])
    return total / jnp.float32(2 * B)


def ref_ntxent_loss(zis, zjs, temperature, use_cosine_similarity=False):
    """Independent NumPy reference mirroring the PyTorch forward pass."""
    zis = np.asarray(jax.device_get(zis)).astype(np.float32)
    zjs = np.asarray(jax.device_get(zjs)).astype(np.float32)
    B = zis.shape[0]
    R = np.concatenate([zjs, zis], axis=0)                      # (2B, D)
    if use_cosine_similarity:
        n = np.linalg.norm(R, axis=-1, keepdims=True)
        Rn = R / np.maximum(n, 1e-8)
        S = Rn @ Rn.T
    else:
        S = R @ R.T
    N = 2 * B
    l_pos = np.diag(S, k=B)
    r_pos = np.diag(S, k=-B)
    positives = np.concatenate([l_pos, r_pos])[:, None]         # (2B, 1)
    mask = (1 - (np.eye(N) + np.eye(N, k=B) + np.eye(N, k=-B))).astype(bool)
    negatives = S[mask].reshape(N, N - 2)
    logits = np.concatenate([positives, negatives], axis=1) / temperature
    m = logits.max(axis=-1, keepdims=True)
    lse = m[:, 0] + np.log(np.exp(logits - m).sum(axis=-1))
    loss = (lse - logits[:, 0]).sum()                           # CE(sum), label 0
    return loss / N


if __name__ == "__main__":
    key = jax.random.PRNGKey(0)
    k1, k2 = jax.random.split(key)

    B, D = 32, 64
    temperature = 0.5

    # Native bf16 through the DMA (perf review); upcast / f32 accumulation
    # happens inside the kernel.
    zis = jax.random.normal(k1, (B, D), dtype=jnp.float32).astype(jnp.bfloat16)
    zjs = jax.random.normal(k2, (B, D), dtype=jnp.float32).astype(jnp.bfloat16)

    # Dot-product similarity, forced multi-tile grid (exercises tiling,
    # self-mask offsets and the parallel per-tile partial sums).
    out_dot = jax.block_until_ready(
        ntxent_loss(zis, zjs, temperature, use_cosine_similarity=False, tile_rows=8))
    ref_dot = ref_ntxent_loss(zis, zjs, temperature, use_cosine_similarity=False)
    assert np.isfinite(float(out_dot))
    assert abs(float(out_dot) - float(ref_dot)) <= 2e-3 * max(1.0, abs(float(ref_dot))), (
        float(out_dot), float(ref_dot))

    # Cosine similarity, auto tile size.
    out_cos = jax.block_until_ready(
        ntxent_loss(zis, zjs, temperature, use_cosine_similarity=True))
    ref_cos = ref_ntxent_loss(zis, zjs, temperature, use_cosine_similarity=True)
    assert np.isfinite(float(out_cos))
    assert abs(float(out_cos) - float(ref_cos)) <= 1e-2 * max(1.0, abs(float(ref_cos))), (
        float(out_cos), float(ref_cos))

    print("KERNEL_OK")
</pallas_src>

<mosaic_0001>
module attributes {stable_mosaic.version = 11 : i64} {
  func.func @_ntxent_kernel(%arg0: i32, %arg1: memref<32x64xbf16, #tpu.memory_space<vmem>>, %arg2: memref<32x64xbf16, #tpu.memory_space<vmem>>, %arg3: memref<1x8x128xf32, #tpu.memory_space<vmem>>) attributes {dimension_semantics = [#tpu.dimension_semantics<parallel>], iteration_bounds = array<i64: 4>, scalar_prefetch = 0 : i64, scratch_operands = 0 : i64, tpu.core_type = #tpu.core_type<tc>, window_params = [{pipeline_mode = #tpu.pipeline_mode<synchronous>, transform_indices = @transform_0, window_bounds = array<i64: 32, 64>}, {pipeline_mode = #tpu.pipeline_mode<synchronous>, transform_indices = @transform_1, window_bounds = array<i64: 32, 64>}, {transform_indices = @transform_2, window_bounds = array<i64: 1, 8, 128>}]} {
    %c8_i32 = arith.constant 8 : i32
    %0 = arith.muli %arg0, %c8_i32 : i32
    %1 = tpu.assume_multiple %0, 8 : i32
    %c0 = arith.constant 0 : index
    %c0_0 = arith.constant 0 : index
    %2 = vector.load %arg1[%c0, %c0_0] : memref<32x64xbf16, #tpu.memory_space<vmem>>, vector<32x64xbf16>
    %c0_1 = arith.constant 0 : index
    %c0_2 = arith.constant 0 : index
    %3 = vector.load %arg2[%c0_1, %c0_2] : memref<32x64xbf16, #tpu.memory_space<vmem>>, vector<32x64xbf16>
    %4 = arith.index_cast %1 : i32 to index
    %c0_3 = arith.constant 0 : index
    %5 = vector.load %arg1[%4, %c0_3] : memref<32x64xbf16, #tpu.memory_space<vmem>>, vector<8x64xbf16>
    %6 = arith.index_cast %1 : i32 to index
    %c0_4 = arith.constant 0 : index
    %7 = vector.load %arg2[%6, %c0_4] : memref<32x64xbf16, #tpu.memory_space<vmem>>, vector<8x64xbf16>
    %cst = arith.constant dense<0.000000e+00> : vector<8x32xf32>
    %8 = tpu.matmul %5, %2, %cst {dimension_numbers = #tpu.dot_dimension_numbers<[1], [1], [0], [0], [0, 0, 1, 0], [], []>} : vector<8x64xbf16>, vector<32x64xbf16>, vector<8x32xf32> -> vector<8x32xf32>
    %cst_5 = arith.constant 2.000000e+00 : f32
    %9 = vector.broadcast %cst_5 : f32 to vector<8x32xf32>
    %10 = arith.mulf %8, %9 : vector<8x32xf32>
    %cst_6 = arith.constant dense<0.000000e+00> : vector<8x32xf32>
    %11 = tpu.matmul %5, %3, %cst_6 {dimension_numbers = #tpu.dot_dimension_numbers<[1], [1], [0], [0], [0, 0, 1, 0], [], []>} : vector<8x64xbf16>, vector<32x64xbf16>, vector<8x32xf32> -> vector<8x32xf32>
    %cst_7 = arith.constant 2.000000e+00 : f32
    %12 = vector.broadcast %cst_7 : f32 to vector<8x32xf32>
    %13 = arith.mulf %11, %12 : vector<8x32xf32>
    %cst_8 = arith.constant dense<0.000000e+00> : vector<8x32xf32>
    %14 = tpu.matmul %7, %2, %cst_8 {dimension_numbers = #tpu.dot_dimension_numbers<[1], [1], [0], [0], [0, 0, 1, 0], [], []>} : vector<8x64xbf16>, vector<32x64xbf16>, vector<8x32xf32> -> vector<8x32xf32>
    %cst_9 = arith.constant 2.000000e+00 : f32
    %15 = vector.broadcast %cst_9 : f32 to vector<8x32xf32>
    %16 = arith.mulf %14, %15 : vector<8x32xf32>
    %cst_10 = arith.constant dense<0.000000e+00> : vector<8x32xf32>
    %17 = tpu.matmul %7, %3, %cst_10 {dimension_numbers = #tpu.dot_dimension_numbers<[1], [1], [0], [0], [0, 0, 1, 0], [], []>} : vector<8x64xbf16>, vector<32x64xbf16>, vector<8x32xf32> -> vector<8x32xf32>
    %cst_11 = arith.constant 2.000000e+00 : f32
    %18 = vector.broadcast %cst_11 : f32 to vector<8x32xf32>
    %19 = arith.mulf %17, %18 : vector<8x32xf32>
    %20 = tpu.iota {dimensions = array<i32: 0>} : vector<8x32xi32>
    %21 = vector.broadcast %1 : i32 to vector<8x32xi32>
    %22 = arith.addi %20, %21 : vector<8x32xi32>
    %23 = tpu.iota {dimensions = array<i32: 1>} : vector<8x32xi32>
    %24 = arith.cmpi eq, %22, %23 : vector<8x32xi32>
    %cst_12 = arith.constant -3.40282347E+38 : f32
    %25 = vector.broadcast %cst_12 : f32 to vector<8x32xf32>
    %26 = arith.select %24, %25, %10 : vector<8x32xi1>, vector<8x32xf32>
    %cst_13 = arith.constant -3.40282347E+38 : f32
    %27 = vector.broadcast %cst_13 : f32 to vector<8x32xf32>
    %28 = arith.select %24, %27, %19 : vector<8x32xi1>, vector<8x32xf32>
    %29 = arith.extf %5 : vector<8x64xbf16> to vector<8x64xf32>
    %30 = arith.extf %7 : vector<8x64xbf16> to vector<8x64xf32>
    %31 = arith.mulf %29, %30 : vector<8x64xf32>
    %cst_14 = arith.constant dense<0.000000e+00> : vector<8xf32>
    %32 = vector.multi_reduction <add>, %31, %cst_14 [1] : vector<8x64xf32> to vector<8xf32>
    %33 = vector.shape_cast %32 : vector<8xf32> to vector<8x1xf32>
    %cst_15 = arith.constant 2.000000e+00 : f32
    %34 = vector.broadcast %cst_15 : f32 to vector<8x1xf32>
    %35 = arith.mulf %33, %34 : vector<8x1xf32>
    %cst_16 = arith.constant dense<0xFF800000> : vector<8xf32>
    %36 = vector.multi_reduction <maximumf>, %26, %cst_16 [1] : vector<8x32xf32> to vector<8xf32>
    %37 = vector.shape_cast %36 : vector<8xf32> to vector<8x1xf32>
    %cst_17 = arith.constant dense<0xFF800000> : vector<8xf32>
    %38 = vector.multi_reduction <maximumf>, %13, %cst_17 [1] : vector<8x32xf32> to vector<8xf32>
    %39 = vector.shape_cast %38 : vector<8xf32> to vector<8x1xf32>
    %40 = arith.maximumf %37, %39 : vector<8x1xf32>
    %41 = vector.broadcast %40 : vector<8x1xf32> to vector<8x32xf32>
    %42 = arith.subf %26, %41 : vector<8x32xf32>
    %43 = math.exp %42 : vector<8x32xf32>
    %cst_18 = arith.constant dense<0.000000e+00> : vector<8xf32>
    %44 = vector.multi_reduction <add>, %43, %cst_18 [1] : vector<8x32xf32> to vector<8xf32>
    %45 = vector.shape_cast %44 : vector<8xf32> to vector<8x1xf32>
    %46 = vector.broadcast %40 : vector<8x1xf32> to vector<8x32xf32>
    %47 = arith.subf %13, %46 : vector<8x32xf32>
    %48 = math.exp %47 : vector<8x32xf32>
    %cst_19 = arith.constant dense<0.000000e+00> : vector<8xf32>
    %49 = vector.multi_reduction <add>, %48, %cst_19 [1] : vector<8x32xf32> to vector<8xf32>
    %50 = vector.shape_cast %49 : vector<8xf32> to vector<8x1xf32>
    %51 = arith.addf %45, %50 : vector<8x1xf32>
    %52 = math.log %51 : vector<8x1xf32>
    %53 = arith.addf %40, %52 : vector<8x1xf32>
    %cst_20 = arith.constant dense<0xFF800000> : vector<8xf32>
    %54 = vector.multi_reduction <maximumf>, %16, %cst_20 [1] : vector<8x32xf32> to vector<8xf32>
    %55 = vector.shape_cast %54 : vector<8xf32> to vector<8x1xf32>
    %cst_21 = arith.constant dense<0xFF800000> : vector<8xf32>
    %56 = vector.multi_reduction <maximumf>, %28, %cst_21 [1] : vector<8x32xf32> to vector<8xf32>
    %57 = vector.shape_cast %56 : vector<8xf32> to vector<8x1xf32>
    %58 = arith.maximumf %55, %57 : vector<8x1xf32>
    %59 = vector.broadcast %58 : vector<8x1xf32> to vector<8x32xf32>
    %60 = arith.subf %16, %59 : vector<8x32xf32>
    %61 = math.exp %60 : vector<8x32xf32>
    %cst_22 = arith.constant dense<0.000000e+00> : vector<8xf32>
    %62 = vector.multi_reduction <add>, %61, %cst_22 [1] : vector<8x32xf32> to vector<8xf32>
    %63 = vector.shape_cast %62 : vector<8xf32> to vector<8x1xf32>
    %64 = vector.broadcast %58 : vector<8x1xf32> to vector<8x32xf32>
    %65 = arith.subf %28, %64 : vector<8x32xf32>
    %66 = math.exp %65 : vector<8x32xf32>
    %cst_23 = arith.constant dense<0.000000e+00> : vector<8xf32>
    %67 = vector.multi_reduction <add>, %66, %cst_23 [1] : vector<8x32xf32> to vector<8xf32>
    %68 = vector.shape_cast %67 : vector<8xf32> to vector<8x1xf32>
    %69 = arith.addf %63, %68 : vector<8x1xf32>
    %70 = math.log %69 : vector<8x1xf32>
    %71 = arith.addf %58, %70 : vector<8x1xf32>
    %72 = arith.addf %53, %71 : vector<8x1xf32>
    %cst_24 = arith.constant 2.000000e+00 : f32
    %73 = vector.broadcast %cst_24 : f32 to vector<8x1xf32>
    %74 = arith.mulf %73, %35 : vector<8x1xf32>
    %75 = arith.subf %72, %74 : vector<8x1xf32>
    %76 = vector.shape_cast %75 : vector<8x1xf32> to vector<1x8x1xf32>
    %cst_25 = arith.constant dense<0.000000e+00> : vector<1xf32>
    %77 = vector.multi_reduction <add>, %76, %cst_25 [1, 2] : vector<1x8x1xf32> to vector<1xf32>
    %78 = vector.shape_cast %77 : vector<1xf32> to vector<1x1x1xf32>
    %79 = vector.extract %78[0, 0, 0] : f32 from vector<1x1x1xf32>
    %80 = vector.broadcast %79 : f32 to vector<1x8x128xf32>
    %c0_26 = arith.constant 0 : index
    %c0_27 = arith.constant 0 : index
    %c0_28 = arith.constant 0 : index
    %81 = vector.load %arg3[%c0_26, %c0_27, %c0_28] : memref<1x8x128xf32, #tpu.memory_space<vmem>>, vector<1x8x128xf32>
    tpu.vector_store %arg3[%c0_26, %c0_27, %c0_28], %80 {strides = array<i32>} : memref<1x8x128xf32, #tpu.memory_space<vmem>>, vector<1x8x128xf32>,
    return
  }
  func.func @transform_0(%arg0: i32) -> (i32, i32) {
    %c0_i32 = arith.constant 0 : i32
    %c0_i32_0 = arith.constant 0 : i32
    %c0_i32_1 = arith.constant 0 : i32
    return %c0_i32, %c0_i32_0 : i32, i32
  }
  func.func @transform_1(%arg0: i32) -> (i32, i32) {
    %c0_i32 = arith.constant 0 : i32
    %c0_i32_0 = arith.constant 0 : i32
    %c0_i32_1 = arith.constant 0 : i32
    return %c0_i32, %c0_i32_0 : i32, i32
  }
  func.func @transform_2(%arg0: i32) -> (i32, i32, i32) {
    %c0_i32 = arith.constant 0 : i32
    %c0_i32_0 = arith.constant 0 : i32
    %c0_i32_1 = arith.constant 0 : i32
    return %arg0, %c0_i32, %c0_i32_0 : i32, i32, i32
  }
}

</mosaic_0001>

<bundles_post_ra>
// kernel: tpu_custom_call.1
= control target key start
LH: loop header
LB: loop body
LE: loop exit
PB: predicated region body
PF: predicated region fallthrough
CT: control target
= control target key end

     0   :  { %7 = vsyncpa [#allocation3], 0  ;;  %s1043_s0 = inlined_call_operand.hbm [shape: bf16[32,64], index: 0, kind: input, shape index: {}]   ;;  %s1044_s1 = inlined_call_operand.hbm [shape: bf16[32,64], index: 1, kind: input, shape index: {}]   ;;  %s1045_s2 = inlined_call_operand.hbm [shape: f32[4,8,128], index: 2, kind: output, shape index: {}]  }
   0x1   :  { %8 = vsyncpa [#allocation6], 0 }
   0x2   :  { %9 = vsyncpa [#allocation4], 0 }
   0x3   :  { %11 = vsyncpa [#allocation4 + $0x1], 0  ;;  %s838_s9 = smov 0   ;;  %s840_s10 = smov 0  }
   0x4   :  { %s842_s11 = smov 0   ;;  %s844_s12 = smov 0  }
   0x5 LB: > { %s859_s13 = sadd.s32 4294967295, %s814_s12   ;;  %s539_s14 = sadd.s32 4294967294, %s814_s12   ;;  %s814_s12 = sphi %s844_s12, %s1063_s12   ;;  %s810_s11 = sphi %s842_s11, %s1062_s11   ;;  %s806_s10 = sphi %s840_s10, %s1061_s10   ;;  %s802_s9 = sphi %s838_s9, %s1060_s9  }
   0x6   : > { %s863_s15 = sadd.s32 1, %s814_s12   ;;  %s66_s16 = sadd.s32 1, %s810_s11 }
   0x7   : > { %s63_s17 = ssub.s32 %s814_s12, %s863_s15  ;;  %p76_p0 = scmp.ne.s32.totalorder %s810_s11, %s806_s10 }
   0x8   : > { %p64_p1 = scmp.eq.s32.totalorder %s63_s17, 0  ;;  %p77_p2 = scmp.eq.s32.totalorder %s859_s13, 3 }
   0x9   : > { %p82_p3 = scmp.ne.s32.totalorder %s806_s10, %s802_s9  ;;  %p83_p4 = scmp.eq.s32.totalorder %s539_s14, 3 }
   0xa   : > { %s874_s18 = scalar_select %p64_p1, %s810_s11, %s66_s16  }
   0xb   : > { %p876_p5 = por %p77_p2, %p76_p0  ;;  %p880_p6 = por %p83_p4, %p82_p3 }
   0xc   : > { %p540_p7 = scmp.ge.s32.totalorder %s814_s12, 1  ;;  %p90_p8 = scmp.lt.s32.totalorder %s814_s12, 5 }
   0xd   : > { %s1049_s19 = scalar_select %p876_p5, 1, 0 }
   0xe   : > { %s1050_s20 = scalar_select %p880_p6, 1, 0 }
   0xf   : > { %p1046_p9 = scmp.eq.s32.totalorder %s859_s13, 0  ;;  %p887_p10 = pnand %p540_p7, %p90_p8 }
  0x10   : > { %s816_s22 = smov [#allocation2]   ;;  %s817_s25 = smov [#allocation5]  }
  0x11   : > { %s1051_s21 = scalar_select %p887_p10, 1, 0 }
  0x12   : > { %s102_s23 = sshll.u32 %s816_s22, 4  ;;  %p618_p11 = pneg %p887_p10  ;;  %s103_s23 = int_to_ptr.vmem [resolvable:$true] %s102_s23 }
  0x13   : > { %s115_s26 = sshll.u32 %s817_s25, 4  ;;  %s688_s29 = scalar_lea.hbm %s1043_s0, 256  ;;  %s899_s26 = int_to_ptr.vmem [resolvable:$true] %s115_s26 }
  0x14   : > { %p895_p12 = pnand %p1046_p9, %p618_p11  ;;  %p689_p13 = scmp.ne.s32.totalorder %s1043_s0, %s688_s29 }
  0x15   : > { %p695_p3 = scmp.lt.u32.totalorder %s688_s29, %s1043_s0 }
  0x16   : > { %p690_p0 = pneg %p895_p12 }
  0x18   : > { %p691_p1 = pnand %p690_p0, %p689_p13 }
  0x1a   : > { %p692_p2 = pneg %p691_p1 }
  0x1c   : > { %p697_p4 = pnand %p695_p3, %p692_p2 }
  0x1e   : > { %700 = shalt.err (!%p697_p4)
}
  0x1f   : > { %s701_s6 = scalar_lea.vmem %s103_s23, 256  ;;  %p709_p9 = scmp.lt.s32.totalorder %s103_s23, %s103_s23 }
  0x20   : > { %p702_p7 = scmp.ne.s32.totalorder %s103_s23, %s701_s6  ;;  %p710_p6 = scmp.lt.s32.totalorder %s701_s6, %s701_s6 }
  0x22   : > { %p704_p8 = pnand %p702_p7, %p690_p0  ;;  %p711_p5 = por %p710_p6, %p709_p9 }
  0x24   : > { %p705_p11 = pneg %p704_p8 }
  0x26   : > { %p712_p10 = pnand %p711_p5, %p705_p11 }
  0x28   : > { %715 = shalt.err (!%p712_p10)
}
  0x29   : > { %s818_s7 = smov 64   ;;  %s819_s8 = smov 4  }
  0x2a   : > { %621 = dma.hbm_to_vmem [thread:$0]  (!%p895_p12), %s1043_s0, 256, %s103_s23, [#allocation3], %s818_s7, %s818_s7, %s819_s8  }
  0x2b   : > { %s716_s25 = scalar_lea.hbm %s1044_s1, 256 }
  0x2c   : > { %p717_p13 = scmp.ne.s32.totalorder %s1044_s1, %s716_s25  ;;  %p723_p9 = scmp.lt.u32.totalorder %s716_s25, %s1044_s1 }
  0x2e   : > { %p719_p5 = pnand %p717_p13, %p690_p0 }
  0x30   : > { %p720_p6 = pneg %p719_p5 }
  0x32   : > { %p725_p10 = pnand %p723_p9, %p720_p6 }
  0x34   : > { %728 = shalt.err (!%p725_p10)
}
  0x35   : > { %s729_s23 = scalar_lea.vmem %s899_s26, 256  ;;  %p737_p4 = scmp.lt.s32.totalorder %s899_s26, %s899_s26 }
  0x36   : > { %p730_p1 = scmp.ne.s32.totalorder %s899_s26, %s729_s23  ;;  %p738_p7 = scmp.lt.s32.totalorder %s729_s23, %s729_s23 }
  0x38   : > { %p732_p2 = pnand %p730_p1, %p690_p0  ;;  %p739_p8 = por %p738_p7, %p737_p4 }
  0x3a   : > { %p733_p3 = pneg %p732_p2 }
  0x3c   : > { %p740_p11 = pnand %p739_p8, %p733_p3 }
  0x3e   : > { %743 = shalt.err (!%p740_p11)
}
  0x3f   : > { %624 = dma.hbm_to_vmem [thread:$0]  (!%p895_p12), %s1044_s1, 256, %s899_s26, [#allocation6], %s818_s7, %s818_s7, %s819_s8  }
  0x40   : > { %p1053_p13 = scmp.ne.s32.totalorder %s1051_s21, 0 }
  0x41   : > { %p1054_p5 = scmp.eq.s32.totalorder (!%p1053_p13), %s859_s13, 0 }
  0x42   : > { %131 = sbr.rel (%p1053_p13) target bundleno = 875 (0x36b), region = 28 }
  0x49   : > { %789 = dma.done.wait (%p1054_p5), [#allocation3], 256   ;;  %p1055_p0 = pmov %p1054_p5 }
  0x4b   : > { %791 = vsyncadd (%p1055_p0), [#allocation3], 4294967040  ;;  %p1056_p6 = pmov %p1055_p0 }
  0x4c   : > { %p1057_p9 = pmov %p1055_p0 }
  0x4d   : > { %793 = dma.done.wait (%p1056_p6), [#allocation6], 256  }
  0x4e   : > { %795 = vsyncadd (%p1057_p9), [#allocation6], 4294967040  ;;  %v820_v0 = vmov 0.0   ;;  %vm821_vm0 = vmmov 0   ;;  %vm180_vm1 = vcmask 523264   ;;  %v672_v1 = vld [vmem:[#allocation2] sm:$0xff]   ;;  %v373_v11 = vlaneseq }
  0x4f   : > { %574 = vmatprep.subr.bf16.mxu0 %v820_v0  ;;  %582 = vmatprep.subr.bf16.mxu1 %v820_v0  ;;  %v673_v2 = vld [vmem:[#allocation5] sm:$0xff]   ;;  %v185_v3 = vsel %vm180_vm1, %v672_v1, 0  ;;  %s547_s21 = sshll.u32 %s859_s13, 3  ;;  %v674_v5 = vld [vmem:[#allocation2 + $0x8] sm:$0xff]   ;;  %v675_v6 = vld [vmem:[#allocation5 + $0x8] sm:$0xff]   ;;  %vm389_vm3 = vcmask 261120  }
  0x50   : > { %578 = vmatprep.mubr.msk.bf16.mxu0 %vm821_vm0, %v820_v0  ;;  %586 = vmatprep.mubr.msk.bf16.mxu1 %vm821_vm0, %v820_v0  ;;  %v242_v4 = vsel %vm180_vm1, %v673_v2, 0  ;;  %s162_s24 = sshra.s32 %s547_s21, 3  ;;  %v188_v7 = vsel %vm180_vm1, %v674_v5, 0  ;;  %v245_v8 = vsel %vm180_vm1, %v675_v6, 0  ;;  %v374_v12 = vshrl.u32 %v373_v11, 7  ;;  %s149_s7 = sand.u32 1, %s806_s10  }
  0x51   : > { %575 = vmatpush3.bf16.xpose.msra.mxu0 %v185_v3  ;;  %583 = vmatpush3.bf16.xpose.msra.mxu1 %v242_v4  ;;  %s548_s26 = sshll.u32 %s162_s24, 2  ;;  %v375_v13 = vstv %s547_s21  ;;  %v378_v15 = vand.u32 127, %v373_v11  ;;  %vm439_vm4 = vcmask 7168   ;;  %s546_s8 = sshll.u32 %s149_s7, 3 }
  0x52   : > { %576 = vmatprep.subr.bf16.mxu0 %v820_v0  ;;  %584 = vmatprep.subr.bf16.mxu1 %v820_v0  ;;  %s165_s5 = scalar_lea.vmem [#allocation2], %s548_s26  ;;  %s168_s6 = scalar_lea.vmem [#allocation5], %s548_s26  ;;  %v376_v14 = vadd.s32 %v375_v13, %v374_v12 }
  0x53   : > { %v967_v9 = vld [vmem:[%s165_s5] sm:$0xf]  ;;  %s151_s14 = scalar_lea.vmem [#allocation7], %s546_s8  ;;  %s559_s17 = sshll.u32 %s859_s13, 7 }
  0x54   : > { %v975_v10 = vld [vmem:[%s168_s6] sm:$0xf]  ;;  %vm379_vm2 = vcmp.eq.s32.totalorder %v376_v14, %v378_v15  ;;  %v382_v60 = vunpack.c.l.bf16 %v967_v9  ;;  %s466_s16 = sshll.u32 %s151_s14, 4  ;;  %s1003_s28 = scalar_lea.hbm %s1045_s2, %s559_s17  ;;  %s998_s16 = int_to_ptr.vmem [resolvable:$true] %s466_s16 }
  0x55   : > { %v383_v61 = vunpack.c.l.bf16 %v975_v10  ;;  %s453_s29 = scalar_lea.sflag [#allocation4], %s149_s7  ;;  %s744_s30 = scalar_lea.vmem %s998_s16, 128 }
  0x56   : > { %p745_p12 = scmp.ne.s32.totalorder %s998_s16, %s744_s30  ;;  %p1058_p10 = scmp.ne.s32.totalorder %s1049_s19, 0 }
  0x57   : > { %v384_v62 = vmul.f32 %v383_v61, %v382_v60  ;;  %s822_s13 = smov [#allocation7]  }
  0x58   : > { %p746_p1 = pnand %p745_p12, %p1058_p10  ;;  %s748_s23 = sshll.u32 %s822_s13, 4  ;;  %s749_s23 = int_to_ptr.vmem [resolvable:$false] %s748_s23 }
  0x59   : > { %577 = vmatpush3.bf16.xpose.msra.mxu0 %v188_v7  ;;  %585 = vmatpush3.bf16.xpose.msra.mxu1 %v245_v8  ;;  %s750_s3 = scalar_lea.vmem %s749_s23, 256  ;;  %p751_p3 = scmp.lt.s32.totalorder %s998_s16, %s749_s23 }
  0x5a   : > { %590 = vmatprep.subr.bf16.mxu0 %v820_v0  ;;  %598 = vmatprep.subr.bf16.mxu1 %v820_v0  ;;  %p747_p2 = pneg %p746_p1  ;;  %p752_p4 = scmp.lt.s32.totalorder %s750_s3, %s744_s30 }
  0x5c   : > { %p753_p7 = por %p752_p4, %p751_p3 }
  0x5e   : > { %p754_p8 = pnand %p753_p7, %p747_p2 }
  0x60   : > { %579 = vmatmul.mubr.msk.bf16.vlgmr.msra.gmra.mrb[0].mxu0 %vm180_vm1, %v967_v9  ;;  %587 = vmatmul.mubr.msk.bf16.vlgmr.msra.gmra.mrb[0].mxu1 %vm180_vm1, %v967_v9 }
  0x61   : > { %591 = vmatpush3.bf16.xpose.msra.mxu0 %v185_v3  ;;  %599 = vmatpush3.bf16.xpose.msra.mxu1 %v242_v4  ;;  %v385_v3 = vsel %vm180_vm1, %v384_v62, 0.0 }
  0x62   : > { %592 = vmatprep.subr.bf16.mxu0 %v820_v0  ;;  %600 = vmatprep.subr.bf16.mxu1 %v820_v0 }
  0x63   : > { %594 = vmatprep.mubr.msk.bf16.mxu0 %vm821_vm0, %v820_v0  ;;  %602 = vmatprep.mubr.msk.bf16.mxu1 %vm821_vm0, %v820_v0 }
  0x69   : > { %593 = vmatpush3.bf16.xpose.msra.mxu0 %v188_v7  ;;  %601 = vmatpush3.bf16.xpose.msra.mxu1 %v245_v8 }
  0x70   : > { %595 = vmatmul.mubr.msk.bf16.vlgmr.msra.gmra.mrb[4].mxu0 %vm180_vm1, %v975_v10  ;;  %603 = vmatmul.mubr.msk.bf16.vlgmr.msra.gmra.mrb[4].mxu1 %vm180_vm1, %v975_v10 }
 0x133   : > { %v224_v16 = vpop.f32.mrb[0].mxu0  ;;  %v281_v19 = vpop.f32.mrb[0].mxu1 }
 0x134   : > { %v230_v17 = vmul.f32 2.0, %v224_v16  ;;  %v580_v18 = vpop.f32.mrb[1].mxu0  ;;  %v287_v20 = vmul.f32 2.0, %v281_v19  ;;  %v588_v22 = vpop.f32.mrb[1].mxu1 }
 0x135   : > { %v227_v21 = vpop.f32.mrb[2].mxu0  ;;  %v284_v24 = vpop.f32.mrb[2].mxu1 }
 0x136   : > { %v581_v23 = vpop.f32.mrb[3].mxu0  ;;  %v380_v25 = vsel %vm379_vm2, -3.4028235e+38, %v230_v17  ;;  %v589_v26 = vpop.f32.mrb[3].mxu1  ;;  %v393_v28 = vsel %vm389_vm3, %v287_v20, -inf }
 0x137   : > { %v390_v27 = vsel %vm389_vm3, %v380_v25, -inf }
 0x138   : > { %391 = vmax.xlane.f32.xlu0 %v390_v27 }
 0x13c   : > { %394 = vmax.xlane.f32.xlu0 %v393_v28 }
 0x143   : > { %v325_v29 = vpop.f32.mrb[4].mxu0  ;;  %v366_v31 = vpop.f32.mrb[4].mxu1 }
 0x144   : > { %v331_v30 = vmul.f32 2.0, %v325_v29  ;;  %v596_v32 = vpop.f32.mrb[5].mxu0  ;;  %v372_v33 = vmul.f32 2.0, %v366_v31  ;;  %v604_v34 = vpop.f32.mrb[5].mxu1 }
 0x145   : > { %v328_v35 = vpop.f32.mrb[6].mxu0  ;;  %v369_v36 = vpop.f32.mrb[6].mxu1 }
 0x146   : > { %v597_v37 = vpop.f32.mrb[7].mxu0  ;;  %v413_v38 = vsel %vm389_vm3, %v331_v30, -inf  ;;  %v605_v39 = vpop.f32.mrb[7].mxu1  ;;  %v381_v40 = vsel %vm379_vm2, -3.4028235e+38, %v372_v33 }
 0x147   : > { %414 = vmax.xlane.f32.xlu1 %v413_v38  ;;  %v416_v41 = vsel %vm389_vm3, %v381_v40, -inf }
 0x14b   : > { %417 = vmax.xlane.f32.xlu1 %v416_v41 }
 0x1c5   : > { %v392_v42 = vpop.xlane.xlu0 %391 }
 0x1c9   : > { %v395_v43 = vpop.xlane.xlu0 %394 }
 0x1ca   : > { %v396_v44 = vmax.f32 %v392_v42, %v395_v43 }
 0x1cc   : > { %v397_v45 = vsub.f32 %v380_v25, %v396_v44  ;;  %v403_v46 = vsub.f32 %v287_v20, %v396_v44 }
 0x1ce   : > { %v398_v47 = vmul.f32 1.442695, %v397_v45  ;;  %v404_v48 = vmul.f32 1.442695, %v403_v46 }
 0x1d0   : > { %676 = vpow2.f32 %v398_v47 }
 0x1d1   : > { %678 = vpow2.f32 %v404_v48 }
 0x1d4   : > { %v415_v49 = vpop.xlane.xlu1 %414 }
 0x1d8   : > { %v418_v50 = vpop.xlane.xlu1 %417 }
 0x1d9   : > { %v419_v51 = vmax.f32 %v415_v49, %v418_v50 }
 0x1da   : > { %v677_v52 = vpop.eup %676 }
 0x1db   : > { %v679_v53 = vpop.eup %678  ;;  %v420_v54 = vsub.f32 %v331_v30, %v419_v51  ;;  %v426_v55 = vsub.f32 %v381_v40, %v419_v51  ;;  %v400_v56 = vsel %vm389_vm3, %v677_v52, 0.0 }
 0x1dc   : > { %401 = vadd.xlane.f32.xlu0 %v400_v56  ;;  %v406_v57 = vsel %vm389_vm3, %v679_v53, 0.0 }
 0x1dd   : > { %v421_v58 = vmul.f32 1.442695, %v420_v54  ;;  %v427_v59 = vmul.f32 1.442695, %v426_v55  ;;  %407 = vadd.xlane.f32.xlu1 %v406_v57 }
 0x1df   : > { %680 = vpow2.f32 %v421_v58 }
 0x1e0   : > { %682 = vpow2.f32 %v427_v59 }
 0x1e9   : > { %v681_v63 = vpop.eup %680 }
 0x1ea   : > { %v683_v0 = vpop.eup %682  ;;  %v423_v1 = vsel %vm389_vm3, %v681_v63, 0.0 }
 0x1eb   : > { %v429_v2 = vsel %vm389_vm3, %v683_v0, 0.0  ;;  %424 = vadd.xlane.f32.xlu0 %v423_v1 }
 0x1ec   : > { %430 = vadd.xlane.f32.xlu1 %v429_v2 }
 0x1ef   : > { %386 = vadd.xlane.f32.xlu0 %v385_v3 }
 0x269   : > { %v402_v4 = vpop.xlane.xlu0 %401 }
 0x26a   : > { %v408_v5 = vpop.xlane.xlu1 %407 }
 0x26b   : > { %v409_v6 = vadd.f32 %v408_v5, %v402_v4 }
 0x26d   : > { %684 = vlog2.f32 %v409_v6 }
 0x277   : > { %v685_v10 = vpop.eup %684 }
 0x278   : > { %v425_v7 = vpop.xlane.xlu0 %424  ;;  %v411_v12 = vmul.f32 0.6931472, %v685_v10 }
 0x279   : > { %v431_v8 = vpop.xlane.xlu1 %430 }
 0x27a   : > { %v432_v9 = vadd.f32 %v431_v8, %v425_v7  ;;  %v412_v16 = vadd.f32 %v411_v12, %v396_v44 }
 0x27c   : > { %686 = vlog2.f32 %v432_v9  ;;  %v387_v11 = vpop.xlane.xlu0 %386 }
 0x27d   : > { %v388_v13 = vmul.f32 2.0, %v387_v11 }
 0x27f   : > { %v437_v18 = vmul.f32 2.0, %v388_v13 }
 0x286   : > { %v687_v14 = vpop.eup %686 }
 0x287   : > { %v434_v15 = vmul.f32 0.6931472, %v687_v14 }
 0x289   : > { %v435_v17 = vadd.f32 %v434_v15, %v419_v51 }
 0x28b   : > { %v436_v19 = vadd.f32 %v435_v17, %v412_v16 }
 0x28d   : > { %v438_v20 = vsub.f32 %v436_v19, %v437_v18 }
 0x28f   : > { %v440_v21 = vsel %vm439_vm4, %v438_v20, 0.0 }
 0x290   : > { %441 = vadd.xlane.f32.xlu1 %v440_v21 }
 0x31d   : > { %v442_v22 = vpop.xlane.xlu1 %441 }
 0x31e   : > { %v443_v23 = vrot.slane %v442_v22, 4 }
 0x320   : > { %v444_v24 = vadd.f32 %v443_v23, %v442_v22 }
 0x322   : > { %v445_v25 = vrot.slane %v444_v24, 2 }
 0x324   : > { %v446_v26 = vadd.f32 %v445_v25, %v444_v24 }
 0x326   : > { %v447_v27 = vrot.slane %v446_v26, 1 }
 0x328   : > { %v448_v28 = vadd.f32 %v447_v27, %v446_v26 }
 0x32a   : > { %606 = vpush %v448_v28 }
 0x35b   : > { %s607_s22 = spop %606 }
 0x35c   : > { %v450_v29 = vstv %s607_s22 }
 0x35d   : > { %451 = vst [vmem:[%s151_s14] sm:$0xff] %v450_v29 }
 0x35e   : > { %757 = shalt.err (!%p754_p8)
}
 0x35f   : > { %s758_s4 = scalar_lea.hbm %s1003_s28, 128  ;;  %s762_s26 = scalar_lea.hbm %s1045_s2, 512 }
 0x360   : > { %p759_p11 = scmp.ne.s32.totalorder %s1003_s28, %s758_s4  ;;  %p763_p0 = scmp.lt.u32.totalorder %s1003_s28, %s1045_s2 }
 0x361   : > { %p764_p6 = scmp.lt.u32.totalorder %s762_s26, %s758_s4  ;;  %p766_p12 = scmp.lt.u32.totalorder %s758_s4, %s1003_s28 }
 0x362   : > { %p760_p13 = pnand %p759_p11, %p1058_p10 }
 0x363   : > { %p765_p9 = por %p764_p6, %p763_p0 }
 0x364   : > { %p761_p5 = pneg %p760_p13 }
 0x365   : > { %p767_p1 = por %p766_p12, %p765_p9 }
 0x367   : > { %p768_p2 = pnand %p767_p1, %p761_p5 }
 0x369   : > { %771 = shalt.err (!%p768_p2)
}
 0x36a   : > { %616 = dma.vmem_to_hbm [thread:$0]  (%p1058_p10), %s998_s16, 128, %s1003_s28, %s453_s29  }
 0x36b PF: > { %p633_p3 = scmp.ge.s32.totalorder %s814_s12, 2  ;;  %s478_s7 = sand.u32 1, %s802_s9  }
 0x36c   : > { %p1059_p4 = scmp.ne.s32.totalorder %s1050_s20, 0  ;;  %s479_s8 = scalar_lea.sflag [#allocation4], %s478_s7 }
 0x36e   : > { %p626_p7 = pnand %p633_p3, %p1059_p4 }
 0x370   : > { %797 = dma.done.wait (!%p626_p7), %s479_s8, 128  }
 0x371   : > { %799 = vsyncadd (!%p626_p7), %s479_s8, 4294967168  ;;  %p14_p8 = scmp.ge.s32.totalorder %s863_s15, 6   ;;  %s1060_s9 = smov %s806_s10 }
 0x372   : > { %s1061_s10 = smov %s810_s11  ;;  %s1062_s11 = smov %s874_s18 }
 0x373   : > { %s1063_s12 = smov %s863_s15  ;;  %16 = sbr.rel (!%p14_p8) target bundleno = 5 (0x5), region = 71 }
 0x37a   :  { %484 = vsyncpa [#allocation3], 1 }
 0x37b   :  { %486 = vsyncpa [#allocation3 + $0x1], 1 }
 0x37c   :  { %487 = vsyncpa [#allocation6], 1 }
 0x37d   :  { %488 = vsyncpa [#allocation4], 1 }
 0x37e   :  { %490 = vsyncpa [#allocation4 + $0x1], 1 }

</bundles_post_ra>
